<compile_context>
chip_gen: v7x
topology: tpu7x:2x2x1
jax: 0.10.0
libtpu: 0.0.40
codegen_flags: <defaults>
</compile_context>

<pallas_src>
import math

import jax
import jax.numpy as jnp
from jax.experimental import pallas as pl
from jax.experimental.pallas import tpu as pltpu

# ---- model hyperparameters (small, consistent with the module's __init__) ----
B = 2            # batch
S = 8            # sequence length
HID = 32         # hid_dim
N_HEADS = 4      # n_heads
HEAD_DIM = 8     # head_dim
PF = 64          # pf_dim
EPS = 1e-12      # layer_norm_epsilon
NHD = N_HEADS * HEAD_DIM        # 32
BS = B * S                      # 16  (flattened query rows)
HBS = N_HEADS * BS              # 64  (head-packed key axis)
SCALE = 1.0 / math.sqrt(HEAD_DIM)
NEG_BIG = -1e9                  # value used by masked_fill_ in the module
_LOG2_BS = BS.bit_length() - 1          # 4 (power-of-two shift instead of int div)
_LOG2_HD = HEAD_DIM.bit_length() - 1    # 3


def _layer_norm(x, gamma, beta):
    mu = jnp.mean(x, axis=-1, keepdims=True)
    var = jnp.mean((x - mu) ** 2, axis=-1, keepdims=True)
    return (x - mu) * jax.lax.rsqrt(var + EPS) * gamma + beta


def _gelu_exact(x):
    # torch.nn.functional.gelu default == exact erf-based gelu
    return 0.5 * x * (1.0 + jax.lax.erf(x * jnp.float32(1.0 / math.sqrt(2.0))))


def encoder_layer_kernel(
    x_ref,      # (BS, HID)
    mask_ref,   # (BS, BS)      1.0 == drop this (query,key) pair (padding OR cross-batch)
    wqkv_ref,   # (HID, 3*NHD)  [Wq | Wk | Wv] lane-packed
    bqkv_ref,   # (1, 3*NHD)
    wo_ref,     # (NHD, HID)
    w1_ref,     # (HID, PF)
    cb1_ref,    # (1, PF)
    w2_ref,     # (PF, HID)
    p32_ref,    # (6, HID) rows: [bo; g1; be1; g2; be2; cb2]
    out_ref,    # (B, S, HID)
    attn_ref,   # (B, S, S)     head-0 attention probabilities
):
    f32 = jnp.float32
    x = x_ref[...]                                                    # (BS, HID)

    # ---- 1 MXU push: fused lane-packed Q/K/V projection ---------------------
    qkv = jnp.dot(x, wqkv_ref[...], preferred_element_type=f32) + bqkv_ref[...]
    q = qkv[:, 0:NHD]                # (BS, NHD): column h*HEAD_DIM + d  <->  head h, dim d
    k = qkv[:, NHD:2 * NHD]
    v = qkv[:, 2 * NHD:3 * NHD]

    # ---- block-diagonal per-head K / V slabs (heads packed on the key axis) ----
    # keep[h*BS + kk, g*HEAD_DIM + d] == 1  iff  h == g
    row = jax.lax.broadcasted_iota(jnp.int32, (HBS, NHD), 0)
    col = jax.lax.broadcasted_iota(jnp.int32, (HBS, NHD), 1)
    keep = ((row >> _LOG2_BS) == (col >> _LOG2_HD)).astype(f32)       # (HBS, NHD)
    k_bd = jnp.concatenate([k] * N_HEADS, axis=0) * keep              # (HBS, NHD)
    v_bd = jnp.concatenate([v] * N_HEADS, axis=0) * keep              # (HBS, NHD)

    # ---- 1 MXU push: all-head attention scores ------------------------------
    scores = jnp.einsum("qd,nd->qn", q, k_bd,
                        preferred_element_type=f32) * f32(SCALE)       # (BS, HBS)

    # ---- per-head softmax with exact masked_fill_(-1e9) semantics (off-MXU) ----
    mask01 = mask_ref[...]
    prob_blocks = []
    for h in range(N_HEADS):                                           # static, N_HEADS=4
        sh = scores[:, h * BS:(h + 1) * BS]
        sh = jnp.where(mask01 > 0.5, f32(NEG_BIG), sh)                 # REPLACE, not add
        m = jnp.max(sh, axis=-1, keepdims=True)
        e = jnp.exp(sh - m)
        prob_blocks.append(e / jnp.sum(e, axis=-1, keepdims=True))
    prob = jnp.concatenate(prob_blocks, axis=1)                        # (BS, HBS)

    # ---- 1 MXU push: context, already in (BS, NHD) heads-on-lanes layout ----
    ctx = jnp.dot(prob, v_bd, preferred_element_type=f32)              # (BS, NHD)

    # ---- 1 MXU push: fused output projection --------------------------------
    attn_out = jnp.dot(ctx, wo_ref[...], preferred_element_type=f32) + p32_ref[0:1, :]

    # ---- residual + layer norm 1 ---------------------------------------------
    ln1 = _layer_norm(x + attn_out, p32_ref[1:2, :], p32_ref[2:3, :])

    # ---- 2 MXU pushes: position-wise FFN (Conv1d kernel_size=1 == channel matmul) ----
    h1 = _gelu_exact(jnp.dot(ln1, w1_ref[...], preferred_element_type=f32) + cb1_ref[...])
    h2 = jnp.dot(h1, w2_ref[...], preferred_element_type=f32) + p32_ref[5:6, :]

    # ---- residual + layer norm 2 ---------------------------------------------
    y = _layer_norm(h2 + ln1, p32_ref[3:4, :], p32_ref[4:5, :])

    # ---- outputs stored directly in (B, S, *) layout (no wrapper slicing/stacking) ----
    p0 = prob_blocks[0]                                                # head-0 probs (BS, BS)
    for b in range(B):                                                 # static, B=2
        out_ref[b, :, :] = y[b * S:(b + 1) * S, :]
        attn_ref[b, :, :] = p0[b * S:(b + 1) * S, b * S:(b + 1) * S]


def pack_params(p):
    """One-time (parameter-load-time) packing of the 16 tensors into dense slabs."""
    return {
        "wqkv": jnp.concatenate([p["wq"], p["wk"], p["wv"]], axis=1),   # (HID, 3*NHD)
        "bqkv": jnp.concatenate([p["bq"], p["bk"], p["bv"]], axis=1),   # (1, 3*NHD)
        "wo": p["wo"],                                                  # (NHD, HID)
        "w1": p["w1"], "cb1": p["cb1"], "w2": p["w2"],
        "p32": jnp.concatenate([p["bo"], p["g1"], p["be1"],
                                p["g2"], p["be2"], p["cb2"]], axis=0),  # (6, HID)
    }


@jax.jit
def encoder_layer(x, mask_f, packed):
    """x: (B,S,HID) f32; mask_f: (B,S,S) f32 (1.0 == masked); packed: pack_params(...)."""
    x2d = x.reshape(BS, HID)

    # Combined (query, key) drop mask over the flattened B*S key axis:
    #   1.0 where the pair is padding-masked OR crosses batches (enables batch fusion).
    mask2d = mask_f.reshape(BS, S)
    mask_cat = jnp.concatenate([mask2d] * B, axis=1)                    # (BS, BS)
    bid = jnp.repeat(jnp.arange(B, dtype=jnp.int32), S)
    same = bid[:, None] == bid[None, :]                                 # constant under jit
    mask01 = jnp.where(same, mask_cat, jnp.float32(1.0))                # (BS, BS)

    in_arrays = [x2d, mask01, packed["wqkv"], packed["bqkv"], packed["wo"],
                 packed["w1"], packed["cb1"], packed["w2"], packed["p32"]]

    def full(shape):
        return pl.BlockSpec(shape, lambda i, _n=len(shape): (0,) * _n)

    in_specs = [full(a.shape) for a in in_arrays]
    out_shape = (jax.ShapeDtypeStruct((B, S, HID), jnp.float32),
                 jax.ShapeDtypeStruct((B, S, S), jnp.float32))
    out_specs = (full((B, S, HID)), full((B, S, S)))

    flops = (2 * BS * HID * 3 * NHD          # fused qkv
             + 2 * BS * NHD * HBS            # packed scores
             + 2 * BS * HBS * NHD            # packed context
             + 2 * BS * NHD * HID            # output projection
             + 2 * BS * HID * PF + 2 * BS * PF * HID)   # FFN
    transcendentals = BS * HBS + BS * PF + 2 * BS
    bytes_accessed = (sum(int(a.size) for a in in_arrays) + B * S * HID + B * S * S) * 4

    out, attn = pl.pallas_call(
        encoder_layer_kernel,
        out_shape=out_shape,
        # One grid step: the whole layer (<100 KiB) lives in VMEM; collapsing the grid
        # removes per-step overhead.  Keep it on one TensorCore at this tiny size (v7x note).
        grid=(1,),
        in_specs=in_specs,
        out_specs=out_specs,
        compiler_params=pltpu.CompilerParams(dimension_semantics=("arbitrary",)),
        cost_estimate=pl.CostEstimate(flops=flops,
                                      transcendentals=transcendentals,
                                      bytes_accessed=bytes_accessed),
    )(*in_arrays)
    return out, attn


# ---------------- plain-JAX reference (for correctness check) ----------------
def reference(x, mask_f, p):
    q = x @ p["wq"] + p["bq"]
    k = x @ p["wk"] + p["bk"]
    v = x @ p["wv"] + p["bv"]
    qh = q.reshape(B, S, N_HEADS, HEAD_DIM).transpose(0, 2, 1, 3)
    kh = k.reshape(B, S, N_HEADS, HEAD_DIM).transpose(0, 2, 1, 3)
    vh = v.reshape(B, S, N_HEADS, HEAD_DIM).transpose(0, 2, 1, 3)
    scores = jnp.einsum("bhqd,bhkd->bhqk", qh, kh) * SCALE
    scores = jnp.where(mask_f[:, None] > 0.5, NEG_BIG, scores)
    prob = jax.nn.softmax(scores, axis=-1)
    ctx = jnp.einsum("bhqk,bhkd->bhqd", prob, vh)
    ctx = ctx.transpose(0, 2, 1, 3).reshape(B, S, NHD)
    attn_out = ctx @ p["wo"] + p["bo"]
    ln1 = _layer_norm(x + attn_out, p["g1"], p["be1"])
    h1 = _gelu_exact(ln1 @ p["w1"] + p["cb1"])
    h2 = h1 @ p["w2"] + p["cb2"]
    ln2 = _layer_norm(h2 + ln1, p["g2"], p["be2"])
    return ln2, prob[:, 0]


def make_params(key):
    ks = jax.random.split(key, 8)
    init = lambda k, shape, s=0.05: (s * jax.random.normal(k, shape)).astype(jnp.float32)
    return {
        "wq": init(ks[0], (HID, NHD)),  "bq": init(ks[0], (1, NHD), 0.01),
        "wk": init(ks[1], (HID, NHD)),  "bk": init(ks[1], (1, NHD), 0.01),
        "wv": init(ks[2], (HID, NHD)),  "bv": init(ks[2], (1, NHD), 0.01),
        "wo": init(ks[3], (NHD, HID)),  "bo": init(ks[3], (1, HID), 0.01),
        "g1": jnp.ones((1, HID), jnp.float32),  "be1": jnp.zeros((1, HID), jnp.float32),
        "w1": init(ks[4], (HID, PF)),   "cb1": init(ks[4], (1, PF), 0.01),
        "w2": init(ks[5], (PF, HID)),   "cb2": init(ks[5], (1, HID), 0.01),
        "g2": jnp.ones((1, HID), jnp.float32),  "be2": jnp.zeros((1, HID), jnp.float32),
    }


if __name__ == "__main__":
    key = jax.random.PRNGKey(0)
    kx, kp = jax.random.split(key)

    x = jax.random.normal(kx, (B, S, HID), dtype=jnp.float32)

    # padding-style mask: batch 0 sees all 8 keys, batch 1 masks the last 2 keys
    lengths = jnp.array([8, 6], dtype=jnp.int32)
    key_idx = jnp.arange(S)[None, None, :]                 # (1, 1, S)
    mask_bool = key_idx >= lengths[:, None, None]          # (B, 1, S)
    mask_f = jnp.broadcast_to(mask_bool, (B, S, S)).astype(jnp.float32)

    params = make_params(kp)
    packed = pack_params(params)      # load-time packing (outside the per-call jitted path)

    out, attn = encoder_layer(x, mask_f, packed)
    out = jax.block_until_ready(out)
    attn = jax.block_until_ready(attn)

    ref_out, ref_attn = reference(x, mask_f, params)
    assert jnp.max(jnp.abs(out - ref_out)) < 1e-3, "encoder output mismatch"
    assert jnp.max(jnp.abs(attn - ref_attn)) < 1e-3, "attention prob mismatch"

    print("KERNEL_OK")
</pallas_src>

<mosaic_0001>
module attributes {stable_mosaic.version = 11 : i64} {
  func.func @encoder_layer_kernel(%arg0: i32, %arg1: memref<16x32xf32, #tpu.memory_space<vmem>>, %arg2: memref<16x16xf32, #tpu.memory_space<vmem>>, %arg3: memref<32x96xf32, #tpu.memory_space<vmem>>, %arg4: memref<1x96xf32, #tpu.memory_space<vmem>>, %arg5: memref<32x32xf32, #tpu.memory_space<vmem>>, %arg6: memref<32x64xf32, #tpu.memory_space<vmem>>, %arg7: memref<1x64xf32, #tpu.memory_space<vmem>>, %arg8: memref<64x32xf32, #tpu.memory_space<vmem>>, %arg9: memref<6x32xf32, #tpu.memory_space<vmem>>, %arg10: memref<2x8x32xf32, #tpu.memory_space<vmem>>, %arg11: memref<2x8x8xf32, #tpu.memory_space<vmem>>) attributes {dimension_semantics = [#tpu.dimension_semantics<arbitrary>], iteration_bounds = array<i64: 1>, scalar_prefetch = 0 : i64, scratch_operands = 0 : i64, tpu.core_type = #tpu.core_type<tc>, window_params = [{pipeline_mode = #tpu.pipeline_mode<synchronous>, transform_indices = @transform_0, window_bounds = array<i64: 16, 32>}, {pipeline_mode = #tpu.pipeline_mode<synchronous>, transform_indices = @transform_1, window_bounds = array<i64: 16, 16>}, {pipeline_mode = #tpu.pipeline_mode<synchronous>, transform_indices = @transform_2, window_bounds = array<i64: 32, 96>}, {pipeline_mode = #tpu.pipeline_mode<synchronous>, transform_indices = @transform_3, window_bounds = array<i64: 1, 96>}, {pipeline_mode = #tpu.pipeline_mode<synchronous>, transform_indices = @transform_4, window_bounds = array<i64: 32, 32>}, {pipeline_mode = #tpu.pipeline_mode<synchronous>, transform_indices = @transform_5, window_bounds = array<i64: 32, 64>}, {pipeline_mode = #tpu.pipeline_mode<synchronous>, transform_indices = @transform_6, window_bounds = array<i64: 1, 64>}, {pipeline_mode = #tpu.pipeline_mode<synchronous>, transform_indices = @transform_7, window_bounds = array<i64: 64, 32>}, {pipeline_mode = #tpu.pipeline_mode<synchronous>, transform_indices = @transform_8, window_bounds = array<i64: 6, 32>}, {pipeline_mode = #tpu.pipeline_mode<synchronous>, transform_indices = @transform_9, window_bounds = array<i64: 2, 8, 32>}, {pipeline_mode = #tpu.pipeline_mode<synchronous>, transform_indices = @transform_10, window_bounds = array<i64: 2, 8, 8>}]} {
    %c0 = arith.constant 0 : index
    %c0_0 = arith.constant 0 : index
    %0 = vector.load %arg1[%c0, %c0_0] : memref<16x32xf32, #tpu.memory_space<vmem>>, vector<16x32xf32>
    %c0_1 = arith.constant 0 : index
    %c0_2 = arith.constant 0 : index
    %1 = vector.load %arg3[%c0_1, %c0_2] : memref<32x96xf32, #tpu.memory_space<vmem>>, vector<32x96xf32>
    %cst = arith.constant dense<0.000000e+00> : vector<16x96xf32>
    %2 = tpu.matmul %0, %1, %cst {dimension_numbers = #tpu.dot_dimension_numbers<[1], [0], [0], [1], [0, 0, 1, 1], [], []>} : vector<16x32xf32>, vector<32x96xf32>, vector<16x96xf32> -> vector<16x96xf32>
    %c0_3 = arith.constant 0 : index
    %c0_4 = arith.constant 0 : index
    %3 = vector.load %arg4[%c0_3, %c0_4] : memref<1x96xf32, #tpu.memory_space<vmem>>, vector<1x96xf32>
    %4 = vector.broadcast %3 : vector<1x96xf32> to vector<16x96xf32>
    %5 = arith.addf %2, %4 : vector<16x96xf32>
    %6 = vector.extract_strided_slice %5 {offsets = [0, 0], sizes = [16, 32], strides = [1, 1]} : vector<16x96xf32> to vector<16x32xf32>
    %7 = vector.extract_strided_slice %5 {offsets = [0, 32], sizes = [16, 32], strides = [1, 1]} : vector<16x96xf32> to vector<16x32xf32>
    %8 = vector.extract_strided_slice %5 {offsets = [0, 64], sizes = [16, 32], strides = [1, 1]} : vector<16x96xf32> to vector<16x32xf32>
    %9 = tpu.iota {dimensions = array<i32: 0>} : vector<64x32xi32>
    %10 = tpu.iota {dimensions = array<i32: 1>} : vector<64x32xi32>
    %c4_i32 = arith.constant 4 : i32
    %11 = vector.broadcast %c4_i32 : i32 to vector<64x32xi32>
    %12 = arith.shrsi %9, %11 : vector<64x32xi32>
    %c3_i32 = arith.constant 3 : i32
    %13 = vector.broadcast %c3_i32 : i32 to vector<64x32xi32>
    %14 = arith.shrsi %10, %13 : vector<64x32xi32>
    %15 = arith.cmpi eq, %12, %14 : vector<64x32xi32>
    %16 = arith.extui %15 : vector<64x32xi1> to vector<64x32xi32>
    %17 = arith.sitofp %16 : vector<64x32xi32> to vector<64x32xf32>
    %18 = tpu.concatenate %7, %7, %7, %7 in 0 : vector<16x32xf32>, vector<16x32xf32>, vector<16x32xf32>, vector<16x32xf32> -> vector<64x32xf32>
    %19 = arith.mulf %18, %17 : vector<64x32xf32>
    %20 = tpu.concatenate %8, %8, %8, %8 in 0 : vector<16x32xf32>, vector<16x32xf32>, vector<16x32xf32>, vector<16x32xf32> -> vector<64x32xf32>
    %21 = arith.mulf %20, %17 : vector<64x32xf32>
    "tpu.trace_start"() <{level = 10 : i32, message = "qd,nd->qn"}> : () -> ()
    %cst_5 = arith.constant dense<0.000000e+00> : vector<16x64xf32>
    %22 = tpu.matmul %6, %19, %cst_5 {dimension_numbers = #tpu.dot_dimension_numbers<[1], [1], [0], [0], [0, 0, 1, 0], [], []>} : vector<16x32xf32>, vector<64x32xf32>, vector<16x64xf32> -> vector<16x64xf32>
    "tpu.trace_stop"() : () -> ()
    %cst_6 = arith.constant 0.353553385 : f32
    %23 = vector.broadcast %cst_6 : f32 to vector<16x64xf32>
    %24 = arith.mulf %22, %23 : vector<16x64xf32>
    %c0_7 = arith.constant 0 : index
    %c0_8 = arith.constant 0 : index
    %25 = vector.load %arg2[%c0_7, %c0_8] : memref<16x16xf32, #tpu.memory_space<vmem>>, vector<16x16xf32>
    %26 = vector.extract_strided_slice %24 {offsets = [0, 0], sizes = [16, 16], strides = [1, 1]} : vector<16x64xf32> to vector<16x16xf32>
    %cst_9 = arith.constant 5.000000e-01 : f32
    %27 = vector.broadcast %cst_9 : f32 to vector<16x16xf32>
    %28 = arith.cmpf ogt, %25, %27 : vector<16x16xf32>
    %cst_10 = arith.constant -1.000000e+09 : f32
    %29 = vector.broadcast %cst_10 : f32 to vector<16x16xf32>
    %30 = arith.select %28, %29, %26 : vector<16x16xi1>, vector<16x16xf32>
    %cst_11 = arith.constant dense<0xFF800000> : vector<16xf32>
    %31 = vector.multi_reduction <maximumf>, %30, %cst_11 [1] : vector<16x16xf32> to vector<16xf32>
    %32 = vector.shape_cast %31 : vector<16xf32> to vector<16x1xf32>
    %33 = vector.broadcast %32 : vector<16x1xf32> to vector<16x16xf32>
    %34 = arith.subf %30, %33 : vector<16x16xf32>
    %35 = math.exp %34 : vector<16x16xf32>
    %cst_12 = arith.constant dense<0.000000e+00> : vector<16xf32>
    %36 = vector.multi_reduction <add>, %35, %cst_12 [1] : vector<16x16xf32> to vector<16xf32>
    %37 = vector.shape_cast %36 : vector<16xf32> to vector<16x1xf32>
    %38 = vector.broadcast %37 : vector<16x1xf32> to vector<16x16xf32>
    %39 = arith.divf %35, %38 : vector<16x16xf32>
    %40 = vector.extract_strided_slice %24 {offsets = [0, 16], sizes = [16, 16], strides = [1, 1]} : vector<16x64xf32> to vector<16x16xf32>
    %cst_13 = arith.constant 5.000000e-01 : f32
    %41 = vector.broadcast %cst_13 : f32 to vector<16x16xf32>
    %42 = arith.cmpf ogt, %25, %41 : vector<16x16xf32>
    %cst_14 = arith.constant -1.000000e+09 : f32
    %43 = vector.broadcast %cst_14 : f32 to vector<16x16xf32>
    %44 = arith.select %42, %43, %40 : vector<16x16xi1>, vector<16x16xf32>
    %cst_15 = arith.constant dense<0xFF800000> : vector<16xf32>
    %45 = vector.multi_reduction <maximumf>, %44, %cst_15 [1] : vector<16x16xf32> to vector<16xf32>
    %46 = vector.shape_cast %45 : vector<16xf32> to vector<16x1xf32>
    %47 = vector.broadcast %46 : vector<16x1xf32> to vector<16x16xf32>
    %48 = arith.subf %44, %47 : vector<16x16xf32>
    %49 = math.exp %48 : vector<16x16xf32>
    %cst_16 = arith.constant dense<0.000000e+00> : vector<16xf32>
    %50 = vector.multi_reduction <add>, %49, %cst_16 [1] : vector<16x16xf32> to vector<16xf32>
    %51 = vector.shape_cast %50 : vector<16xf32> to vector<16x1xf32>
    %52 = vector.broadcast %51 : vector<16x1xf32> to vector<16x16xf32>
    %53 = arith.divf %49, %52 : vector<16x16xf32>
    %54 = vector.extract_strided_slice %24 {offsets = [0, 32], sizes = [16, 16], strides = [1, 1]} : vector<16x64xf32> to vector<16x16xf32>
    %cst_17 = arith.constant 5.000000e-01 : f32
    %55 = vector.broadcast %cst_17 : f32 to vector<16x16xf32>
    %56 = arith.cmpf ogt, %25, %55 : vector<16x16xf32>
    %cst_18 = arith.constant -1.000000e+09 : f32
    %57 = vector.broadcast %cst_18 : f32 to vector<16x16xf32>
    %58 = arith.select %56, %57, %54 : vector<16x16xi1>, vector<16x16xf32>
    %cst_19 = arith.constant dense<0xFF800000> : vector<16xf32>
    %59 = vector.multi_reduction <maximumf>, %58, %cst_19 [1] : vector<16x16xf32> to vector<16xf32>
    %60 = vector.shape_cast %59 : vector<16xf32> to vector<16x1xf32>
    %61 = vector.broadcast %60 : vector<16x1xf32> to vector<16x16xf32>
    %62 = arith.subf %58, %61 : vector<16x16xf32>
    %63 = math.exp %62 : vector<16x16xf32>
    %cst_20 = arith.constant dense<0.000000e+00> : vector<16xf32>
    %64 = vector.multi_reduction <add>, %63, %cst_20 [1] : vector<16x16xf32> to vector<16xf32>
    %65 = vector.shape_cast %64 : vector<16xf32> to vector<16x1xf32>
    %66 = vector.broadcast %65 : vector<16x1xf32> to vector<16x16xf32>
    %67 = arith.divf %63, %66 : vector<16x16xf32>
    %68 = vector.extract_strided_slice %24 {offsets = [0, 48], sizes = [16, 16], strides = [1, 1]} : vector<16x64xf32> to vector<16x16xf32>
    %cst_21 = arith.constant 5.000000e-01 : f32
    %69 = vector.broadcast %cst_21 : f32 to vector<16x16xf32>
    %70 = arith.cmpf ogt, %25, %69 : vector<16x16xf32>
    %cst_22 = arith.constant -1.000000e+09 : f32
    %71 = vector.broadcast %cst_22 : f32 to vector<16x16xf32>
    %72 = arith.select %70, %71, %68 : vector<16x16xi1>, vector<16x16xf32>
    %cst_23 = arith.constant dense<0xFF800000> : vector<16xf32>
    %73 = vector.multi_reduction <maximumf>, %72, %cst_23 [1] : vector<16x16xf32> to vector<16xf32>
    %74 = vector.shape_cast %73 : vector<16xf32> to vector<16x1xf32>
    %75 = vector.broadcast %74 : vector<16x1xf32> to vector<16x16xf32>
    %76 = arith.subf %72, %75 : vector<16x16xf32>
    %77 = math.exp %76 : vector<16x16xf32>
    %cst_24 = arith.constant dense<0.000000e+00> : vector<16xf32>
    %78 = vector.multi_reduction <add>, %77, %cst_24 [1] : vector<16x16xf32> to vector<16xf32>
    %79 = vector.shape_cast %78 : vector<16xf32> to vector<16x1xf32>
    %80 = vector.broadcast %79 : vector<16x1xf32> to vector<16x16xf32>
    %81 = arith.divf %77, %80 : vector<16x16xf32>
    %82 = tpu.concatenate %39, %53, %67, %81 in 1 : vector<16x16xf32>, vector<16x16xf32>, vector<16x16xf32>, vector<16x16xf32> -> vector<16x64xf32>
    %cst_25 = arith.constant dense<0.000000e+00> : vector<16x32xf32>
    %83 = tpu.matmul %82, %21, %cst_25 {dimension_numbers = #tpu.dot_dimension_numbers<[1], [0], [0], [1], [0, 0, 1, 1], [], []>} : vector<16x64xf32>, vector<64x32xf32>, vector<16x32xf32> -> vector<16x32xf32>
    %c0_26 = arith.constant 0 : index
    %c0_27 = arith.constant 0 : index
    %84 = vector.load %arg5[%c0_26, %c0_27] : memref<32x32xf32, #tpu.memory_space<vmem>>, vector<32x32xf32>
    %cst_28 = arith.constant dense<0.000000e+00> : vector<16x32xf32>
    %85 = tpu.matmul %83, %84, %cst_28 {dimension_numbers = #tpu.dot_dimension_numbers<[1], [0], [0], [1], [0, 0, 1, 1], [], []>} : vector<16x32xf32>, vector<32x32xf32>, vector<16x32xf32> -> vector<16x32xf32>
    %c0_29 = arith.constant 0 : index
    %c0_30 = arith.constant 0 : index
    %86 = vector.load %arg9[%c0_29, %c0_30] : memref<6x32xf32, #tpu.memory_space<vmem>>, vector<1x32xf32>
    %87 = vector.broadcast %86 : vector<1x32xf32> to vector<16x32xf32>
    %88 = arith.addf %85, %87 : vector<16x32xf32>
    %89 = arith.addf %0, %88 : vector<16x32xf32>
    %c1 = arith.constant 1 : index
    %c0_31 = arith.constant 0 : index
    %90 = vector.load %arg9[%c1, %c0_31] : memref<6x32xf32, #tpu.memory_space<vmem>>, vector<1x32xf32>
    %c2 = arith.constant 2 : index
    %c0_32 = arith.constant 0 : index
    %91 = vector.load %arg9[%c2, %c0_32] : memref<6x32xf32, #tpu.memory_space<vmem>>, vector<1x32xf32>
    %cst_33 = arith.constant dense<0.000000e+00> : vector<16xf32>
    %92 = vector.multi_reduction <add>, %89, %cst_33 [1] : vector<16x32xf32> to vector<16xf32>
    %93 = vector.shape_cast %92 : vector<16xf32> to vector<16x1xf32>
    %cst_34 = arith.constant 3.200000e+01 : f32
    %94 = vector.broadcast %cst_34 : f32 to vector<16x1xf32>
    %95 = arith.divf %93, %94 : vector<16x1xf32>
    %96 = vector.broadcast %95 : vector<16x1xf32> to vector<16x32xf32>
    %97 = arith.subf %89, %96 : vector<16x32xf32>
    %98 = arith.mulf %97, %97 : vector<16x32xf32>
    %cst_35 = arith.constant dense<0.000000e+00> : vector<16xf32>
    %99 = vector.multi_reduction <add>, %98, %cst_35 [1] : vector<16x32xf32> to vector<16xf32>
    %100 = vector.shape_cast %99 : vector<16xf32> to vector<16x1xf32>
    %cst_36 = arith.constant 3.200000e+01 : f32
    %101 = vector.broadcast %cst_36 : f32 to vector<16x1xf32>
    %102 = arith.divf %100, %101 : vector<16x1xf32>
    %103 = vector.broadcast %95 : vector<16x1xf32> to vector<16x32xf32>
    %104 = arith.subf %89, %103 : vector<16x32xf32>
    %cst_37 = arith.constant 9.99999996E-13 : f32
    %105 = vector.broadcast %cst_37 : f32 to vector<16x1xf32>
    %106 = arith.addf %102, %105 : vector<16x1xf32>
    %107 = math.rsqrt %106 : vector<16x1xf32>
    %108 = vector.broadcast %107 : vector<16x1xf32> to vector<16x32xf32>
    %109 = arith.mulf %104, %108 : vector<16x32xf32>
    %110 = vector.broadcast %90 : vector<1x32xf32> to vector<16x32xf32>
    %111 = arith.mulf %109, %110 : vector<16x32xf32>
    %112 = vector.broadcast %91 : vector<1x32xf32> to vector<16x32xf32>
    %113 = arith.addf %111, %112 : vector<16x32xf32>
    %c0_38 = arith.constant 0 : index
    %c0_39 = arith.constant 0 : index
    %114 = vector.load %arg6[%c0_38, %c0_39] : memref<32x64xf32, #tpu.memory_space<vmem>>, vector<32x64xf32>
    %cst_40 = arith.constant dense<0.000000e+00> : vector<16x64xf32>
    %115 = tpu.matmul %113, %114, %cst_40 {dimension_numbers = #tpu.dot_dimension_numbers<[1], [0], [0], [1], [0, 0, 1, 1], [], []>} : vector<16x32xf32>, vector<32x64xf32>, vector<16x64xf32> -> vector<16x64xf32>
    %c0_41 = arith.constant 0 : index
    %c0_42 = arith.constant 0 : index
    %116 = vector.load %arg7[%c0_41, %c0_42] : memref<1x64xf32, #tpu.memory_space<vmem>>, vector<1x64xf32>
    %117 = vector.broadcast %116 : vector<1x64xf32> to vector<16x64xf32>
    %118 = arith.addf %115, %117 : vector<16x64xf32>
    %cst_43 = arith.constant 5.000000e-01 : f32
    %119 = vector.broadcast %cst_43 : f32 to vector<16x64xf32>
    %120 = arith.mulf %119, %118 : vector<16x64xf32>
    %cst_44 = arith.constant 0.707106769 : f32
    %121 = vector.broadcast %cst_44 : f32 to vector<16x64xf32>
    %122 = arith.mulf %118, %121 : vector<16x64xf32>
    %123 = math.erf %122 : vector<16x64xf32>
    %cst_45 = arith.constant 1.000000e+00 : f32
    %124 = vector.broadcast %cst_45 : f32 to vector<16x64xf32>
    %125 = arith.addf %124, %123 : vector<16x64xf32>
    %126 = arith.mulf %120, %125 : vector<16x64xf32>
    %c0_46 = arith.constant 0 : index
    %c0_47 = arith.constant 0 : index
    %127 = vector.load %arg8[%c0_46, %c0_47] : memref<64x32xf32, #tpu.memory_space<vmem>>, vector<64x32xf32>
    %cst_48 = arith.constant dense<0.000000e+00> : vector<16x32xf32>
    %128 = tpu.matmul %126, %127, %cst_48 {dimension_numbers = #tpu.dot_dimension_numbers<[1], [0], [0], [1], [0, 0, 1, 1], [], []>} : vector<16x64xf32>, vector<64x32xf32>, vector<16x32xf32> -> vector<16x32xf32>
    %c5 = arith.constant 5 : index
    %c0_49 = arith.constant 0 : index
    %129 = vector.load %arg9[%c5, %c0_49] : memref<6x32xf32, #tpu.memory_space<vmem>>, vector<1x32xf32>
    %130 = vector.broadcast %129 : vector<1x32xf32> to vector<16x32xf32>
    %131 = arith.addf %128, %130 : vector<16x32xf32>
    %132 = arith.addf %131, %113 : vector<16x32xf32>
    %c3 = arith.constant 3 : index
    %c0_50 = arith.constant 0 : index
    %133 = vector.load %arg9[%c3, %c0_50] : memref<6x32xf32, #tpu.memory_space<vmem>>, vector<1x32xf32>
    %c4 = arith.constant 4 : index
    %c0_51 = arith.constant 0 : index
    %134 = vector.load %arg9[%c4, %c0_51] : memref<6x32xf32, #tpu.memory_space<vmem>>, vector<1x32xf32>
    %cst_52 = arith.constant dense<0.000000e+00> : vector<16xf32>
    %135 = vector.multi_reduction <add>, %132, %cst_52 [1] : vector<16x32xf32> to vector<16xf32>
    %136 = vector.shape_cast %135 : vector<16xf32> to vector<16x1xf32>
    %cst_53 = arith.constant 3.200000e+01 : f32
    %137 = vector.broadcast %cst_53 : f32 to vector<16x1xf32>
    %138 = arith.divf %136, %137 : vector<16x1xf32>
    %139 = vector.broadcast %138 : vector<16x1xf32> to vector<16x32xf32>
    %140 = arith.subf %132, %139 : vector<16x32xf32>
    %141 = arith.mulf %140, %140 : vector<16x32xf32>
    %cst_54 = arith.constant dense<0.000000e+00> : vector<16xf32>
    %142 = vector.multi_reduction <add>, %141, %cst_54 [1] : vector<16x32xf32> to vector<16xf32>
    %143 = vector.shape_cast %142 : vector<16xf32> to vector<16x1xf32>
    %cst_55 = arith.constant 3.200000e+01 : f32
    %144 = vector.broadcast %cst_55 : f32 to vector<16x1xf32>
    %145 = arith.divf %143, %144 : vector<16x1xf32>
    %146 = vector.broadcast %138 : vector<16x1xf32> to vector<16x32xf32>
    %147 = arith.subf %132, %146 : vector<16x32xf32>
    %cst_56 = arith.constant 9.99999996E-13 : f32
    %148 = vector.broadcast %cst_56 : f32 to vector<16x1xf32>
    %149 = arith.addf %145, %148 : vector<16x1xf32>
    %150 = math.rsqrt %149 : vector<16x1xf32>
    %151 = vector.broadcast %150 : vector<16x1xf32> to vector<16x32xf32>
    %152 = arith.mulf %147, %151 : vector<16x32xf32>
    %153 = vector.broadcast %133 : vector<1x32xf32> to vector<16x32xf32>
    %154 = arith.mulf %152, %153 : vector<16x32xf32>
    %155 = vector.broadcast %134 : vector<1x32xf32> to vector<16x32xf32>
    %156 = arith.addf %154, %155 : vector<16x32xf32>
    %157 = vector.extract_strided_slice %156 {offsets = [0, 0], sizes = [8, 32], strides = [1, 1]} : vector<16x32xf32> to vector<8x32xf32>
    %c0_57 = arith.constant 0 : index
    %c0_58 = arith.constant 0 : index
    %c0_59 = arith.constant 0 : index
    %158 = vector.load %arg10[%c0_57, %c0_58, %c0_59] : memref<2x8x32xf32, #tpu.memory_space<vmem>>, vector<1x8x32xf32>
    %159 = vector.shape_cast %158 : vector<1x8x32xf32> to vector<8x32xf32>
    %160 = vector.shape_cast %157 : vector<8x32xf32> to vector<1x8x32xf32>
    tpu.vector_store %arg10[%c0_57, %c0_58, %c0_59], %160 {strides = array<i32>} : memref<2x8x32xf32, #tpu.memory_space<vmem>>, vector<1x8x32xf32>,
    %161 = vector.extract_strided_slice %39 {offsets = [0, 0], sizes = [8, 8], strides = [1, 1]} : vector<16x16xf32> to vector<8x8xf32>
    %c0_60 = arith.constant 0 : index
    %c0_61 = arith.constant 0 : index
    %c0_62 = arith.constant 0 : index
    %162 = vector.load %arg11[%c0_60, %c0_61, %c0_62] : memref<2x8x8xf32, #tpu.memory_space<vmem>>, vector<1x8x8xf32>
    %163 = vector.shape_cast %162 : vector<1x8x8xf32> to vector<8x8xf32>
    %164 = vector.shape_cast %161 : vector<8x8xf32> to vector<1x8x8xf32>
    tpu.vector_store %arg11[%c0_60, %c0_61, %c0_62], %164 {strides = array<i32>} : memref<2x8x8xf32, #tpu.memory_space<vmem>>, vector<1x8x8xf32>,
    %165 = vector.extract_strided_slice %156 {offsets = [8, 0], sizes = [8, 32], strides = [1, 1]} : vector<16x32xf32> to vector<8x32xf32>
    %c1_63 = arith.constant 1 : index
    %c0_64 = arith.constant 0 : index
    %c0_65 = arith.constant 0 : index
    %166 = vector.load %arg10[%c1_63, %c0_64, %c0_65] : memref<2x8x32xf32, #tpu.memory_space<vmem>>, vector<1x8x32xf32>
    %167 = vector.shape_cast %166 : vector<1x8x32xf32> to vector<8x32xf32>
    %168 = vector.shape_cast %165 : vector<8x32xf32> to vector<1x8x32xf32>
    tpu.vector_store %arg10[%c1_63, %c0_64, %c0_65], %168 {strides = array<i32>} : memref<2x8x32xf32, #tpu.memory_space<vmem>>, vector<1x8x32xf32>,
    %169 = vector.extract_strided_slice %39 {offsets = [8, 8], sizes = [8, 8], strides = [1, 1]} : vector<16x16xf32> to vector<8x8xf32>
    %c1_66 = arith.constant 1 : index
    %c0_67 = arith.constant 0 : index
    %c0_68 = arith.constant 0 : index
    %170 = vector.load %arg11[%c1_66, %c0_67, %c0_68] : memref<2x8x8xf32, #tpu.memory_space<vmem>>, vector<1x8x8xf32>
    %171 = vector.shape_cast %170 : vector<1x8x8xf32> to vector<8x8xf32>
    %172 = vector.shape_cast %169 : vector<8x8xf32> to vector<1x8x8xf32>
    tpu.vector_store %arg11[%c1_66, %c0_67, %c0_68], %172 {strides = array<i32>} : memref<2x8x8xf32, #tpu.memory_space<vmem>>, vector<1x8x8xf32>,
    return
  }
  func.func @transform_0(%arg0: i32) -> (i32, i32) {
    %c0_i32 = arith.constant 0 : i32
    %c0_i32_0 = arith.constant 0 : i32
    %c0_i32_1 = arith.constant 0 : i32
    return %c0_i32, %c0_i32_0 : i32, i32
  }
  func.func @transform_1(%arg0: i32) -> (i32, i32) {
    %c0_i32 = arith.constant 0 : i32
    %c0_i32_0 = arith.constant 0 : i32
    %c0_i32_1 = arith.constant 0 : i32
    return %c0_i32, %c0_i32_0 : i32, i32
  }
  func.func @transform_2(%arg0: i32) -> (i32, i32) {
    %c0_i32 = arith.constant 0 : i32
    %c0_i32_0 = arith.constant 0 : i32
    %c0_i32_1 = arith.constant 0 : i32
    return %c0_i32, %c0_i32_0 : i32, i32
  }
  func.func @transform_3(%arg0: i32) -> (i32, i32) {
    %c0_i32 = arith.constant 0 : i32
    %c0_i32_0 = arith.constant 0 : i32
    %c0_i32_1 = arith.constant 0 : i32
    return %c0_i32, %c0_i32_0 : i32, i32
  }
  func.func @transform_4(%arg0: i32) -> (i32, i32) {
    %c0_i32 = arith.constant 0 : i32
    %c0_i32_0 = arith.constant 0 : i32
    %c0_i32_1 = arith.constant 0 : i32
    return %c0_i32, %c0_i32_0 : i32, i32
  }
  func.func @transform_5(%arg0: i32) -> (i32, i32) {
    %c0_i32 = arith.constant 0 : i32
    %c0_i32_0 = arith.constant 0 : i32
    %c0_i32_1 = arith.constant 0 : i32
    return %c0_i32, %c0_i32_0 : i32, i32
  }
  func.func @transform_6(%arg0: i32) -> (i32, i32) {
    %c0_i32 = arith.constant 0 : i32
    %c0_i32_0 = arith.constant 0 : i32
    %c0_i32_1 = arith.constant 0 : i32
    return %c0_i32, %c0_i32_0 : i32, i32
  }
  func.func @transform_7(%arg0: i32) -> (i32, i32) {
    %c0_i32 = arith.constant 0 : i32
    %c0_i32_0 = arith.constant 0 : i32
    %c0_i32_1 = arith.constant 0 : i32
    return %c0_i32, %c0_i32_0 : i32, i32
  }
  func.func @transform_8(%arg0: i32) -> (i32, i32) {
    %c0_i32 = arith.constant 0 : i32
    %c0_i32_0 = arith.constant 0 : i32
    %c0_i32_1 = arith.constant 0 : i32
    return %c0_i32, %c0_i32_0 : i32, i32
  }
  func.func @transform_9(%arg0: i32) -> (i32, i32, i32) {
    %c0_i32 = arith.constant 0 : i32
    %c0_i32_0 = arith.constant 0 : i32
    %c0_i32_1 = arith.constant 0 : i32
    %c0_i32_2 = arith.constant 0 : i32
    return %c0_i32, %c0_i32_0, %c0_i32_1 : i32, i32, i32
  }
  func.func @transform_10(%arg0: i32) -> (i32, i32, i32) {
    %c0_i32 = arith.constant 0 : i32
    %c0_i32_0 = arith.constant 0 : i32
    %c0_i32_1 = arith.constant 0 : i32
    %c0_i32_2 = arith.constant 0 : i32
    return %c0_i32, %c0_i32_0, %c0_i32_1 : i32, i32, i32
  }
}

</mosaic_0001>

<bundles_post_ra>
// kernel: eq.8
= control target key start
LH: loop header
LB: loop body
LE: loop exit
PB: predicated region body
PF: predicated region fallthrough
CT: control target
= control target key end

     0   :  { %vm7_vm0 = vcmask 64512   ;;  %vm13_vm1 = vcmask 130112   ;;  %s39_s0 = inlined_call_operand.vmem [shape: s32[2,8], index: 0, kind: input, shape index: {}]   ;;  %s40_s1 = inlined_call_operand.vmem [shape: s32[16], index: 1, kind: output, shape index: {}]  }
   0x1   :  { %v4_v0 = vld [vmem:[%s39_s0] sm:$0x3]  ;;  %s22_s0 = smov 8  }
   0x2   :  { %5 = vst [vmem:[#allocation1] sm:$0x3] %v4_v0 }
   0x9   :  { %v10_v1 = vld [vmem:[#allocation1 + $0x1] sm:$0x1]   ;;  %v6_v2 = vld [vmem:[#allocation1] sm:$0x1]  }
   0xa   :  { %11 = vrot.lane.b32.xlu0 %v10_v1, %s22_s0  ;;  %8 = vst.msk [vmem:[#allocation0] sm:$0x1] %vm7_vm0, %v6_v2  }
  0x7c   :  { %v12_v3 = vpop.permute.xlu0 %11  }
  0x7d   :  { %14 = vst.msk [vmem:[#allocation0] sm:$0x1] %vm13_vm1, %v12_v3  }
  0x84   :  { %v18_v4 = vld [vmem:[#allocation0] sm:$0x1] }
  0x85   :  { %20 = vst [vmem:[%s40_s1] sm:$0x1] %v18_v4 }

// kernel: encoder_layer.1
= control target key start
LH: loop header
LB: loop body
LE: loop exit
PB: predicated region body
PF: predicated region fallthrough
CT: control target
= control target key end

     0   :  { %16 = vsyncpa [#allocation3], 0  ;;  %vm49_vm0 = vcmask 261120   ;;  %v131_v3 = vlaneseq  ;;  %s1853_s0 = inlined_call_operand.vmem [shape: f32[16,32], index: 0, kind: input, shape index: {}]   ;;  %s1854_s1 = inlined_call_operand.vmem [shape: f32[16,16], index: 1, kind: input, shape index: {}]   ;;  %s1855_s2 = inlined_call_operand.vmem [shape: f32[32,96], index: 2, kind: input, shape index: {}]   ;;  %s1856_s3 = inlined_call_operand.vmem [shape: f32[1,96], index: 3, kind: input, shape index: {}]   ;;  %s1857_s4 = inlined_call_operand.vmem [shape: f32[32,32], index: 4, kind: input, shape index: {}]   ;;  %s1858_s5 = inlined_call_operand.vmem [shape: f32[32,64], index: 5, kind: input, shape index: {}]   ;;  %s1859_s6 = inlined_call_operand.vmem [shape: f32[1,64], index: 6, kind: input, shape index: {}]   ;;  %s1860_s7 = inlined_call_operand.vmem [shape: f32[64,32], index: 7, kind: input, shape index: {}]   ;;  %s1861_s8 = inlined_call_operand.vmem [shape: f32[6,32], index: 8, kind: input, shape index: {}]   ;;  %s1862_s9 = inlined_call_operand.hbm [shape: f32[2,8,32], index: 9, kind: output, shape index: {0}]   ;;  %s1863_s10 = inlined_call_operand.hbm [shape: f32[2,8,8], index: 10, kind: output, shape index: {1}]  }
   0x1   :  { %v38_v0 = vld [vmem:[%s1855_s2] sm:$0xff]  ;;  %v39_v1 = vld [vmem:[%s1855_s2 + $0x8] sm:$0xff]  ;;  %v40_v2 = vld [vmem:[%s1855_s2 + $0x10] sm:$0xff] }
   0x2   :  { %v1224_v4 = vpack.c.bf16 %v39_v1, %v38_v0  ;;  %v41_v5 = vld [vmem:[%s1855_s2 + $0x18] sm:$0xff]  ;;  %v1572_v6 = vld [vmem:[%s1853_s0] sm:$0xff]  ;;  %v132_v8 = vshrl.u32 %v131_v3, 7  ;;  %v141_v9 = vand.u32 127, %v131_v3 }
   0x3   :  { %v1228_v7 = vpack.c.bf16 %v41_v5, %v40_v2  ;;  %1142 = vmatprep.mubr.msk.f32.mxu0 %vm49_vm0, %v1572_v6 }
   0x4   :  { %17 = vsyncpa [#allocation5], 0  ;;  %1225 = vmatprep.subr.bf16.mxu0 %v1224_v4  ;;  %v136_v10 = vadd.s32 32, %v132_v8  ;;  %v137_v11 = vadd.s32 40, %v132_v8  ;;  %v150_v12 = vshra.s32 %v141_v9, 3  ;;  %v133_v13 = vadd.s32 8, %v132_v8 }
   0x5   :  { %1227 = vmatpush3.bf16.msra.mxu0 %v1224_v4  ;;  %v142_v14 = vshra.s32 %v132_v8, 4  ;;  %v138_v15 = vadd.s32 48, %v132_v8  ;;  %v139_v16 = vadd.s32 56, %v132_v8  ;;  %v134_v17 = vadd.s32 16, %v132_v8  ;;  %v1579_v25 = vld [vmem:[%s1853_s0 + $0x8] sm:$0xff]  ;;  %s1490_s0 = smov 32   ;;  %vm1622_vm9 = vmpackc.low %vm49_vm0, %vm49_vm0 }
   0x6   :  { %1229 = vmatprep.subr.bf16.mxu0 %v1228_v7  ;;  %v146_v18 = vshra.s32 %v136_v10, 4  ;;  %v147_v19 = vshra.s32 %v137_v11, 4  ;;  %v143_v20 = vshra.s32 %v133_v13, 4  ;;  %v135_v21 = vadd.s32 24, %v132_v8  ;;  %v1050_v44 = vld [vmem:[%s1856_s3] ss:$0 sm:$0xff] }
   0x7   :  { %vm151_vm1 = vcmp.eq.s32.totalorder %v142_v14, %v150_v12  ;;  %v148_v22 = vshra.s32 %v138_v15, 4  ;;  %v149_v23 = vshra.s32 %v139_v16, 4  ;;  %v144_v24 = vshra.s32 %v134_v17, 4  ;;  %s1491_s3 = smov 96   ;;  %s1492_s26 = smov 112  }
   0x8   :  { %vm155_vm2 = vcmp.eq.s32.totalorder %v146_v18, %v150_v12  ;;  %vm156_vm3 = vcmp.eq.s32.totalorder %v147_v19, %v150_v12  ;;  %vm152_vm4 = vcmp.eq.s32.totalorder %v143_v20, %v150_v12  ;;  %v1489_v26 = vmov 0.0   ;;  %s1493_s27 = smov 80   ;;  %s1495_s12 = smov 16  }
   0x9   :  { %1231 = vmatpush3.bf16.msra.mxu0 %v1228_v7  ;;  %v1053_v27 = vsel %vm151_vm1, 1.0, %v1489_v26  ;;  %v1057_v28 = vsel %vm155_vm2, 1.0, %v1489_v26  ;;  %v1058_v29 = vsel %vm156_vm3, 1.0, %v1489_v26  ;;  %v1054_v30 = vsel %vm152_vm4, 1.0, %v1489_v26  ;;  %s1496_s13 = smov 48   ;;  %s1497_s25 = smov 120  }
   0xa   :  { %vm157_vm5 = vcmp.eq.s32.totalorder %v148_v22, %v150_v12  ;;  %v1581_v31 = vpack.i.bf16 %v1058_v29, %v1057_v28  ;;  %v1583_v32 = vpack.i.bf16 %v1054_v30, %v1053_v27  ;;  %vm158_vm6 = vcmp.eq.s32.totalorder %v149_v23, %v150_v12  ;;  %v371_v28 = vld [vmem:[%s1854_s1 + $0x8] sm:$0xff] }
   0xb   :  { %v1059_v33 = vsel %vm157_vm5, 1.0, %v1489_v26  ;;  %v145_v34 = vshra.s32 %v135_v21, 4  ;;  %vm153_vm7 = vcmp.eq.s32.totalorder %v144_v24, %v150_v12  ;;  %v1060_v35 = vsel %vm158_vm6, 1.0, %v1489_v26 }
   0xc   :  { %1143 = vmatmul.mubr.msk.f32.vlgmr.msra.gmra.mrb[0].mxu0 %vm49_vm0, %v1579_v25  ;;  %1328 = vrot.lane.b32.xlu1 %v1581_v31, %s1490_s0  ;;  %v1055_v36 = vsel %vm153_vm7, 1.0, %v1489_v26  ;;  %v1591_v37 = vpack.i.bf16 %v1060_v35, %v1059_v33  ;;  %vm373_vm10 = vcmp.gt.f32.partialorder %v371_v28, 0.5  ;;  %vm376_vm11 = vcmask 130048   ;;  %v370_v35 = vld [vmem:[%s1854_s1] sm:$0xff]  ;;  %s1494_s1 = smov 64  }
   0xd   :  { %1318 = vrot.lane.b32.xlu0 %v1583_v32, %s1490_s0  ;;  %vm154_vm8 = vcmp.eq.s32.totalorder %v145_v34, %v150_v12  ;;  %vm372_vm12 = vcmp.gt.f32.partialorder %v370_v35, 0.5  ;;  %vm1008_vm13 = vcmask 64512   ;;  %vm519_vm14 = vcmask 392192  }
   0xe   :  { %v1056_v38 = vsel %vm154_vm8, 1.0, %v1489_v26  ;;  %vm554_vm15 = vcmask 523264  }
   0xf   :  { %v1593_v39 = vpack.i.bf16 %v1056_v38, %v1055_v36 }
  0x10   :  { %1333 = vrot.lane.b32.xlu1 %v1591_v37, %s1490_s0 }
  0x11   :  { %1323 = vrot.lane.b32.xlu0 %v1593_v39, %s1490_s0 }
  0x7e   :  { %v1329_v41 = vpop.permute.xlu1 %1328 }
  0x7f   :  { %v1319_v40 = vpop.permute.xlu0 %1318  ;;  %v1331_v50 = vunpack.i.h.bf16 %v1329_v41  ;;  %v1330_v54 = vunpack.i.l.bf16 %v1329_v41 }
  0x80   :  { %v1321_v45 = vunpack.i.h.bf16 %v1319_v40  ;;  %v1320_v47 = vunpack.i.l.bf16 %v1319_v40 }
  0x82   :  { %v1334_v43 = vpop.permute.xlu1 %1333 }
  0x83   :  { %v1324_v42 = vpop.permute.xlu0 %1323  ;;  %v1336_v51 = vunpack.i.h.bf16 %v1334_v43  ;;  %v1335_v55 = vunpack.i.l.bf16 %v1334_v43 }
  0x84   :  { %v1326_v46 = vunpack.i.h.bf16 %v1324_v42  ;;  %v1325_v48 = vunpack.i.l.bf16 %v1324_v42 }
  0xdf   :  { %v1144_v49 = vpop.f32.mrb[0].mxu0 }
  0xe0   :  { %v1602_v52 = vadd.f32 %v1144_v49, %v1050_v44  ;;  %v122_v53 = vpop.f32.mrb[1].mxu0 }
  0xe1   :  { %v1604_v56 = vadd.f32 %v1050_v44, %v122_v53 }
  0xe2   :  { %v210_v57 = vmul.f32 %v1326_v46, %v1602_v52  ;;  %v208_v58 = vmul.f32 %v1321_v45, %v1602_v52  ;;  %v214_v61 = vmul.f32 %v1336_v51, %v1602_v52  ;;  %v212_v62 = vmul.f32 %v1331_v50, %v1602_v52 }
  0xe3   :  { %1161 = vmatprep.mubr.msk.f32.mxu1 %vm49_vm0, %v1604_v56  ;;  %v209_v59 = vmul.f32 %v1325_v48, %v1604_v56  ;;  %v207_v60 = vmul.f32 %v1320_v47, %v1604_v56  ;;  %v213_v1 = vmul.f32 %v1335_v55, %v1604_v56  ;;  %v211_v2 = vmul.f32 %v1330_v54, %v1604_v56 }
  0xe5   :  { %v1342_v63 = vpack.i.bf16 %v210_v57, %v209_v59  ;;  %v1337_v0 = vpack.i.bf16 %v208_v58, %v207_v60  ;;  %v1352_v3 = vpack.i.bf16 %v214_v61, %v213_v1  ;;  %v1347_v4 = vpack.i.bf16 %v212_v62, %v211_v2 }
  0xe7   :  { %1343 = vrot.lane.b32.xlu1 %v1342_v63, %s1491_s3  ;;  %1338 = vrot.lane.b32.xlu0 %v1337_v0, %s1491_s3 }
  0xeb   :  { %1353 = vrot.lane.b32.xlu1 %v1352_v3, %s1491_s3  ;;  %1348 = vrot.lane.b32.xlu0 %v1347_v4, %s1491_s3 }
 0x159   :  { %v1344_v5 = vpop.permute.xlu1 %1343  ;;  %v1339_v7 = vpop.permute.xlu0 %1338 }
 0x15a   :  { %v1346_v8 = vunpack.i.h.bf16 %v1344_v5  ;;  %v1345_v9 = vunpack.i.l.bf16 %v1344_v5  ;;  %v1341_v10 = vunpack.i.h.bf16 %v1339_v7  ;;  %v1340_v11 = vunpack.i.l.bf16 %v1339_v7 }
 0x15c   :  { %v1232_v13 = vpack.c.bf16 %v1341_v10, %v1340_v11  ;;  %v1238_v14 = vpack.c.bf16 %v1346_v8, %v1345_v9 }
 0x15d   :  { %v1349_v15 = vpop.permute.xlu0 %1348  ;;  %v1354_v19 = vpop.permute.xlu1 %1353 }
 0x15e   :  { %1234 = vmatprep.subr.msk.bf16.mxu1 %vm1622_vm9, %v1232_v13  ;;  %v1351_v16 = vunpack.i.h.bf16 %v1349_v15  ;;  %v1350_v17 = vunpack.i.l.bf16 %v1349_v15  ;;  %v1356_v20 = vunpack.i.h.bf16 %v1354_v19  ;;  %v1355_v21 = vunpack.i.l.bf16 %v1354_v19 }
 0x15f   :  { %1237 = vmatpush3.bf16.xpose.msk.msra.mxu1 %vm1622_vm9, %v1232_v13 }
 0x160   :  { %1240 = vmatprep.subr.msk.bf16.mxu1 %vm1622_vm9, %v1238_v14  ;;  %v1244_v18 = vpack.c.bf16 %v1351_v16, %v1350_v17  ;;  %v1250_v22 = vpack.c.bf16 %v1356_v20, %v1355_v21 }
 0x167   :  { %1243 = vmatpush3.bf16.xpose.msk.msra.mxu1 %vm1622_vm9, %v1238_v14 }
 0x168   :  { %1246 = vmatprep.subr.msk.bf16.mxu1 %vm1622_vm9, %v1244_v18 }
 0x16f   :  { %1249 = vmatpush3.bf16.xpose.msk.msra.mxu1 %vm1622_vm9, %v1244_v18 }
 0x170   :  { %1252 = vmatprep.subr.msk.bf16.mxu1 %vm1622_vm9, %v1250_v22 }
 0x177   :  { %1255 = vmatpush3.bf16.xpose.msk.msra.mxu1 %vm1622_vm9, %v1250_v22 }
 0x17e   :  { %1162 = vmatmul.mubr.msk.f32.vlgmr.msra.gmra.mrb[0].mxu1 %vm49_vm0, %v1602_v52 }
 0x251   :  { %v1163_v23 = vpop.f32.mrb[0].mxu1 }
 0x252   :  { %v369_v24 = vmul.f32 0.35355338, %v1163_v23  ;;  %v359_v26 = vpop.f32.mrb[1].mxu1 }
 0x253   :  { %v368_v27 = vmul.f32 0.35355338, %v359_v26 }
 0x254   :  { %403 = vrot.lane.b32.xlu1 %v369_v24, %s1492_s26  ;;  %v375_v55 = vsel %vm373_vm10, -1e+09, %v369_v24 }
 0x255   :  { %401 = vrot.lane.b32.xlu0 %v368_v27, %s1492_s26  ;;  %v374_v49 = vsel %vm372_vm12, -1e+09, %v368_v27  ;;  %v380_v57 = vsel %vm376_vm11, %v375_v55, -inf }
 0x256   :  { %v377_v53 = vsel %vm376_vm11, %v374_v49, -inf }
 0x258   :  { %433 = vrot.lane.b32.xlu1 %v369_v24, %s1491_s3 }
 0x259   :  { %431 = vrot.lane.b32.xlu0 %v368_v27, %s1491_s3  ;;  %s1498_s3 = smov [#allocation4]  }
 0x25a   :  { %s1035_s26 = sshll.u32 %s1498_s3, 4  ;;  %s1036_s26 = int_to_ptr.vmem [resolvable:$true] %s1035_s26 }
 0x25b   :  { %p1446_p1 = scmp.lt.s32.totalorder %s1036_s26, %s1036_s26 }
 0x25c   :  { %463 = vrot.lane.b32.xlu1 %v369_v24, %s1493_s27 }
 0x25d   :  { %461 = vrot.lane.b32.xlu0 %v368_v27, %s1493_s27  ;;  %s1441_s27 = scalar_lea.vmem %s1036_s26, 256 }
 0x25e   :  { %p1442_p0 = scmp.ne.s32.totalorder %s1036_s26, %s1441_s27  ;;  %p1447_p2 = scmp.lt.s32.totalorder %s1441_s27, %s1441_s27 }
 0x260   :  { %p1448_p3 = por %p1447_p2, %p1446_p1 }
 0x262   :  { %p1449_p4 = pnand %p1448_p3, %p1442_p0 }
 0x2c6   :  { %v404_v29 = vpop.permute.xlu1 %403 }
 0x2c7   :  { %v408_v30 = vsel %vm373_vm10, -1e+09, %v404_v29  ;;  %v402_v33 = vpop.permute.xlu0 %401 }
 0x2c8   :  { %v412_v34 = vsel %vm376_vm11, %v408_v30, -inf  ;;  %v407_v42 = vsel %vm372_vm12, -1e+09, %v402_v33 }
 0x2c9   :  { %413 = vmax.xlane.f32.xlu1 %v412_v34  ;;  %v409_v45 = vsel %vm376_vm11, %v407_v42, -inf }
 0x2ca   :  { %v434_v36 = vpop.permute.xlu1 %433 }
 0x2cb   :  { %v438_v38 = vsel %vm373_vm10, -1e+09, %v434_v36  ;;  %v432_v40 = vpop.permute.xlu0 %431 }
 0x2cc   :  { %v442_v41 = vsel %vm376_vm11, %v438_v38, -inf  ;;  %v437_v46 = vsel %vm372_vm12, -1e+09, %v432_v40 }
 0x2cd   :  { %443 = vmax.xlane.f32.xlu0 %v442_v41  ;;  %v439_v50 = vsel %vm376_vm11, %v437_v46, -inf }
 0x2ce   :  { %v464_v48 = vpop.permute.xlu1 %463 }
 0x2cf   :  { %v462_v43 = vpop.permute.xlu0 %461  ;;  %v468_v51 = vsel %vm373_vm10, -1e+09, %v464_v48 }
 0x2d0   :  { %v467_v44 = vsel %vm372_vm12, -1e+09, %v462_v43  ;;  %v472_v54 = vsel %vm376_vm11, %v468_v51, -inf }
 0x2d1   :  { %410 = vmax.xlane.f32.xlu0 %v409_v45  ;;  %v469_v47 = vsel %vm376_vm11, %v467_v44, -inf }
 0x2d2   :  { %470 = vmax.xlane.f32.xlu1 %v469_v47 }
 0x2d5   :  { %440 = vmax.xlane.f32.xlu0 %v439_v50 }
 0x2d6   :  { %378 = vmax.xlane.f32.xlu1 %v377_v53 }
 0x2d9   :  { %473 = vmax.xlane.f32.xlu0 %v472_v54 }
 0x2dd   :  { %381 = vmax.xlane.f32.xlu0 %v380_v57 }
 0x2e7   :  { %1358 = vrot.lane.b32.xlu1 %v1583_v32, %s1494_s1 }
 0x2eb   :  { %1368 = vrot.lane.b32.xlu1 %v1581_v31, %s1494_s1 }
 0x356   :  { %v414_v58 = vpop.xlane.xlu1 %413 }
 0x357   :  { %v416_v59 = vsub.f32 %v408_v30, %v414_v58 }
 0x359   :  { %v419_v60 = vmul.f32 1.442695, %v416_v59 }
 0x35a   :  { %v444_v61 = vpop.xlane.xlu0 %443 }
 0x35b   :  { %1397 = vpow2.f32 %v419_v60  ;;  %v446_v62 = vsub.f32 %v438_v38, %v444_v61 }
 0x35d   :  { %v449_v63 = vmul.f32 1.442695, %v446_v62 }
 0x35e   :  { %v411_v0 = vpop.xlane.xlu0 %410 }
 0x35f   :  { %1399 = vpow2.f32 %v449_v63  ;;  %v415_v1 = vsub.f32 %v407_v42, %v411_v0  ;;  %v471_v2 = vpop.xlane.xlu1 %470 }
 0x360   :  { %v475_v4 = vsub.f32 %v467_v44, %v471_v2 }
 0x361   :  { %v417_v3 = vmul.f32 1.442695, %v415_v1 }
 0x362   :  { %v441_v5 = vpop.xlane.xlu0 %440  ;;  %v477_v8 = vmul.f32 1.442695, %v475_v4 }
 0x363   :  { %1401 = vpow2.f32 %v417_v3  ;;  %v445_v7 = vsub.f32 %v437_v46, %v441_v5  ;;  %v379_v23 = vpop.xlane.xlu1 %378 }
 0x364   :  { %v383_v26 = vsub.f32 %v374_v49, %v379_v23 }
 0x365   :  { %v1668_v32 = vpop.eup %1397  ;;  %v447_v31 = vmul.f32 1.442695, %v445_v7 }
 0x366   :  { %v474_v9 = vpop.xlane.xlu0 %473  ;;  %v424_v10 = vsel %vm376_vm11, %v1668_v32, 0.0  ;;  %v385_v28 = vmul.f32 1.442695, %v383_v26 }
 0x367   :  { %1403 = vpow2.f32 %v447_v31  ;;  %v476_v11 = vsub.f32 %v468_v51, %v474_v9  ;;  %425 = vadd.xlane.f32.xlu0 %v424_v10 }
 0x368   :  { %1405 = vpow2.f32 %v477_v8 }
 0x369   :  { %v1672_v12 = vpop.eup %1399  ;;  %v479_v13 = vmul.f32 1.442695, %v476_v11 }
 0x36a   :  { %v454_v14 = vsel %vm376_vm11, %v1672_v12, 0.0  ;;  %v382_v24 = vpop.xlane.xlu0 %381 }
 0x36b   :  { %1407 = vpow2.f32 %v479_v13  ;;  %455 = vadd.xlane.f32.xlu0 %v454_v14  ;;  %v384_v27 = vsub.f32 %v375_v55, %v382_v24 }
 0x36c   :  { %1409 = vpow2.f32 %v385_v28 }
 0x36d   :  { %v1402_v15 = vpop.eup %1401  ;;  %v387_v29 = vmul.f32 1.442695, %v384_v27 }
 0x36e   :  { %v421_v16 = vsel %vm376_vm11, %v1402_v15, 0.0 }
 0x36f   :  { %422 = vadd.xlane.f32.xlu1 %v421_v16  ;;  %1411 = vpow2.f32 %v387_v29 }
 0x371   :  { %v1677_v17 = vpop.eup %1403 }
 0x372   :  { %v451_v18 = vsel %vm376_vm11, %v1677_v17, 0.0  ;;  %v1681_v19 = vpop.eup %1405 }
 0x373   :  { %452 = vadd.xlane.f32.xlu1 %v451_v18  ;;  %v481_v22 = vsel %vm376_vm11, %v1681_v19, 0.0 }
 0x375   :  { %v1683_v20 = vpop.eup %1407 }
 0x376   :  { %v484_v21 = vsel %vm376_vm11, %v1683_v20, 0.0  ;;  %v1693_v30 = vpop.eup %1409 }
 0x377   :  { %485 = vadd.xlane.f32.xlu0 %v484_v21  ;;  %482 = vadd.xlane.f32.xlu1 %v481_v22 }
 0x379   :  { %v1695_v33 = vpop.eup %1411 }
 0x37a   :  { %v392_v34 = vsel %vm376_vm11, %v1695_v33, 0.0 }
 0x388   :  { %1373 = vrot.lane.b32.xlu1 %v1591_v37, %s1494_s1  ;;  %v389_v37 = vsel %vm376_vm11, %v1693_v30, 0.0 }
 0x38d   :  { %1363 = vrot.lane.b32.xlu0 %v1593_v39, %s1494_s1  ;;  %v1359_v39 = vpop.permute.xlu1 %1358 }
 0x38e   :  { %v1361_v35 = vunpack.i.h.bf16 %v1359_v39  ;;  %v1360_v36 = vunpack.i.l.bf16 %v1359_v39 }
 0x390   :  { %v240_v40 = vmul.f32 %v1361_v35, %v1602_v52  ;;  %v239_v41 = vmul.f32 %v1360_v36, %v1604_v56 }
 0x391   :  { %v1369_v38 = vpop.permute.xlu1 %1368 }
 0x392   :  { %v1371_v42 = vunpack.i.h.bf16 %v1369_v38  ;;  %v1370_v43 = vunpack.i.l.bf16 %v1369_v38  ;;  %v1377_v46 = vpack.i.bf16 %v240_v40, %v239_v41 }
 0x394   :  { %v244_v44 = vmul.f32 %v1371_v42, %v1602_v52  ;;  %v243_v45 = vmul.f32 %v1370_v43, %v1604_v56  ;;  %v636_v43 = vld [vmem:[%s1857_s4] sm:$0xff] }
 0x396   :  { %v1387_v47 = vpack.i.bf16 %v244_v44, %v243_v45  ;;  %v637_v44 = vld [vmem:[%s1857_s4 + $0x8] sm:$0xff] }
 0x3ac   :  { %393 = vadd.xlane.f32.xlu1 %v392_v34  ;;  %390 = vadd.xlane.f32.xlu0 %v389_v37 }
 0x3c2   :  { %1378 = vrot.lane.b32.xlu0 %v1377_v46, %s1494_s1 }
 0x3c6   :  { %1388 = vrot.lane.b32.xlu0 %v1387_v47, %s1494_s1  ;;  %v1272_v47 = vpack.c.bf16 %v637_v44, %v636_v43  ;;  %v876_v43 = vld [vmem:[%s1860_s7 + $0x28] sm:$0xff] }
 0x3f4   :  { %v426_v48 = vpop.xlane.xlu0 %425 }
 0x3f8   :  { %v456_v50 = vpop.xlane.xlu0 %455 }
 0x3fc   :  { %v423_v49 = vpop.xlane.xlu1 %422 }
 0x3fd   :  { %1413 = vrcp.f32 %v423_v49 }
 0x400   :  { %v453_v51 = vpop.xlane.xlu1 %452 }
 0x401   :  { %1415 = vrcp.f32 %v453_v51  ;;  %v639_v51 = vld [vmem:[%s1857_s4 + $0x18] sm:$0xff] }
 0x404   :  { %v486_v53 = vpop.xlane.xlu0 %485  ;;  %v483_v54 = vpop.xlane.xlu1 %482 }
 0x405   :  { %1417 = vrcp.f32 %v483_v54 }
 0x406   :  { %1419 = vrcp.f32 %v426_v48 }
 0x407   :  { %v1414_v55 = vpop.eup %1413  ;;  %1421 = vrcp.f32 %v456_v50  ;;  %v638_v50 = vld [vmem:[%s1857_s4 + $0x10] sm:$0xff] }
 0x408   :  { %v1364_v57 = vpop.permute.xlu0 %1363  ;;  %v1374_v58 = vpop.permute.xlu1 %1373  ;;  %v428_v59 = vmul.f32 %v1414_v55, %v1402_v15  ;;  %1423 = vrcp.f32 %v486_v53 }
 0x409   :  { %v1366_v60 = vunpack.i.h.bf16 %v1364_v57  ;;  %v1365_v61 = vunpack.i.l.bf16 %v1364_v57  ;;  %v1376_v62 = vunpack.i.h.bf16 %v1374_v58  ;;  %v1375_v63 = vunpack.i.l.bf16 %v1374_v58 }
 0x40a   :  { %493 = vrot.lane.b32.xlu0 %v428_v59, %s1495_s12  ;;  %v1276_v57 = vpack.c.bf16 %v639_v51, %v638_v50 }
 0x40b   :  { %v1416_v0 = vpop.eup %1415  ;;  %v242_v1 = vmul.f32 %v1366_v60, %v1602_v52  ;;  %v241_v2 = vmul.f32 %v1365_v61, %v1604_v56  ;;  %v246_v4 = vmul.f32 %v1376_v62, %v1602_v52  ;;  %v245_v5 = vmul.f32 %v1375_v63, %v1604_v56  ;;  %v1073_v60 = vld [vmem:[%s1861_s8] ss:$0 sm:$0xff] }
 0x40c   :  { %v458_v3 = vmul.f32 %v1416_v0, %v1677_v17 }
 0x40d   :  { %v1382_v7 = vpack.i.bf16 %v242_v1, %v241_v2  ;;  %v1392_v9 = vpack.i.bf16 %v246_v4, %v245_v5 }
 0x40e   :  { %501 = vrot.lane.b32.xlu0 %v458_v3, %s1490_s0 }
 0x40f   :  { %1383 = vrot.lane.b32.xlu1 %v1382_v7, %s1494_s1  ;;  %v1418_v8 = vpop.eup %1417 }
 0x410   :  { %v488_v31 = vmul.f32 %v1418_v8, %v1681_v19  ;;  %v1420_v10 = vpop.eup %1419 }
 0x411   :  { %v430_v11 = vmul.f32 %v1420_v10, %v1668_v32  ;;  %v1422_v52 = vpop.eup %1421 }
 0x412   :  { %509 = vrot.lane.b32.xlu0 %v488_v31, %s1496_s13  ;;  %v460_v56 = vmul.f32 %v1422_v52, %v1672_v12  ;;  %v1424_v13 = vpop.eup %1423 }
 0x413   :  { %1393 = vrot.lane.b32.xlu1 %v1392_v9, %s1494_s1  ;;  %v490_v14 = vmul.f32 %v1424_v13, %v1683_v20  ;;  %v770_v13 = vld [vmem:[%s1858_s5 + $0x8] sm:$0xff] }
 0x417   :  { %495 = vrot.lane.b32.xlu1 %v430_v11, %s1495_s12 }
 0x41b   :  { %503 = vrot.lane.b32.xlu1 %v460_v56, %s1490_s0 }
 0x41f   :  { %511 = vrot.lane.b32.xlu1 %v490_v14, %s1496_s13 }
 0x439   :  { %v391_v15 = vpop.xlane.xlu0 %390  ;;  %v394_v23 = vpop.xlane.xlu1 %393 }
 0x43a   :  { %1425 = vrcp.f32 %v391_v15  ;;  %v771_v15 = vld [vmem:[%s1858_s5 + $0x10] sm:$0xff] }
 0x43b   :  { %1427 = vrcp.f32 %v394_v23 }
 0x43d   :  { %v1379_v16 = vpop.permute.xlu0 %1378 }
 0x43e   :  { %v1381_v17 = vunpack.i.h.bf16 %v1379_v16  ;;  %v1380_v18 = vunpack.i.l.bf16 %v1379_v16  ;;  %v772_v16 = vld [vmem:[%s1858_s5 + $0x18] sm:$0xff] }
 0x440   :  { %v1256_v19 = vpack.c.bf16 %v1381_v17, %v1380_v18  ;;  %v1284_v17 = vpack.c.bf16 %v772_v16, %v771_v15 }
 0x441   :  { %v1389_v12 = vpop.permute.xlu0 %1388 }
 0x442   :  { %1257 = vmatprep.subr.bf16.mxu0 %v1256_v19  ;;  %v1391_v26 = vunpack.i.h.bf16 %v1389_v12  ;;  %v1390_v27 = vunpack.i.l.bf16 %v1389_v12 }
 0x443   :  { %1259 = vmatpush3.bf16.msra.mxu0 %v1256_v19 }
 0x444   :  { %v1426_v21 = vpop.eup %1425  ;;  %v1264_v36 = vpack.c.bf16 %v1391_v26, %v1390_v27  ;;  %v1077_v26 = vld [vmem:[%s1861_s8 + $0x2] ss:$0 sm:$0xff] }
 0x445   :  { %v396_v32 = vmul.f32 %v1426_v21, %v1693_v30  ;;  %v1428_v46 = vpop.eup %1427 }
 0x446   :  { %v1733_v49 = vmul.f32 %v1428_v46, %v1695_v33  ;;  %v878_v46 = vld [vmem:[%s1860_s7 + $0x38] sm:$0xff] }
 0x447   :  { %1009 = vst.msk [vmem:[#allocation4] sm:$0xff] %vm1008_vm13, %v396_v32 }
 0x47c   :  { %v494_v22 = vpop.permute.xlu0 %493 }
 0x47d   :  { %v515_v34 = vsel %vm376_vm11, %v396_v32, %v494_v22 }
 0x480   :  { %v502_v24 = vpop.permute.xlu0 %501 }
 0x481   :  { %v1384_v20 = vpop.permute.xlu1 %1383  ;;  %v517_v39 = vsel %vm49_vm0, %v515_v34, %v502_v24  ;;  %v1076_v24 = vld [vmem:[%s1861_s8 + $0x1] ss:$0 sm:$0xff] }
 0x482   :  { %v1386_v28 = vunpack.i.h.bf16 %v1384_v20  ;;  %v1385_v29 = vunpack.i.l.bf16 %v1384_v20 }
 0x484   :  { %v1260_v37 = vpack.c.bf16 %v1386_v28, %v1385_v29  ;;  %v510_v30 = vpop.permute.xlu0 %509 }
 0x485   :  { %v1394_v35 = vpop.permute.xlu1 %1393  ;;  %v520_v38 = vsel %vm519_vm14, %v517_v39, %v510_v30  ;;  %v871_v30 = vld [vmem:[%s1860_s7] sm:$0xff] }
 0x486   :  { %v1396_v40 = vunpack.i.h.bf16 %v1394_v35  ;;  %v1395_v41 = vunpack.i.l.bf16 %v1394_v35  ;;  %1261 = vmatprep.subr.bf16.mxu0 %v1260_v37  ;;  %1180 = vmatprep.mubr.msk.f32.mxu0 %vm554_vm15, %v520_v38  ;;  %v872_v35 = vld [vmem:[%s1860_s7 + $0x8] sm:$0xff]  ;;  %v873_v38 = vld [vmem:[%s1860_s7 + $0x10] sm:$0xff] }
 0x487   :  { %1263 = vmatpush3.bf16.msra.mxu0 %v1260_v37 }
 0x488   :  { %1265 = vmatprep.subr.bf16.mxu0 %v1264_v36  ;;  %v1268_v45 = vpack.c.bf16 %v1396_v40, %v1395_v41  ;;  %v874_v40 = vld [vmem:[%s1860_s7 + $0x18] sm:$0xff] }
 0x489   :  { %v496_v42 = vpop.permute.xlu1 %495  ;;  %v1292_v41 = vpack.c.bf16 %v874_v40, %v873_v38 }
 0x48a   :  { %v516_v53 = vsel %vm376_vm11, %v1733_v49, %v496_v42  ;;  %v875_v42 = vld [vmem:[%s1860_s7 + $0x20] sm:$0xff] }
 0x48b   :  { %1267 = vmatpush3.bf16.msra.mxu0 %v1264_v36  ;;  %v1288_v36 = vpack.c.bf16 %v872_v35, %v871_v30  ;;  %v1296_v44 = vpack.c.bf16 %v876_v43, %v875_v42 }
 0x48c   :  { %1269 = vmatprep.subr.bf16.mxu0 %v1268_v45 }
 0x48d   :  { %v504_v48 = vpop.permute.xlu1 %503  ;;  %1289 = vmatprep.subr.bf16.mxu1 %v1288_v36 }
 0x48e   :  { %v518_v54 = vsel %vm49_vm0, %v516_v53, %v504_v48  ;;  %1291 = vmatpush3.bf16.msra.mxu1 %v1288_v36  ;;  %v1078_v48 = vld [vmem:[%s1859_s6] ss:$0 sm:$0xff] }
 0x48f   :  { %1271 = vmatpush3.bf16.msra.mxu0 %v1268_v45  ;;  %1293 = vmatprep.subr.bf16.mxu1 %v1292_v41  ;;  %v877_v45 = vld [vmem:[%s1860_s7 + $0x30] sm:$0xff] }
 0x490   :  { %1273 = vmatprep.subr.bf16.mxu0 %v1272_v47 }
 0x491   :  { %v512_v55 = vpop.permute.xlu1 %511 }
 0x492   :  { %v521_v33 = vsel %vm519_vm14, %v518_v54, %v512_v55  ;;  %1295 = vmatpush3.bf16.msra.mxu1 %v1292_v41 }
 0x493   :  { %1181 = vmatmul.mubr.msk.f32.vlgmr.msra.gmra.mrb[2].mxu0 %vm554_vm15, %v521_v33  ;;  %1297 = vmatprep.subr.bf16.mxu1 %v1296_v44 }
 0x494   :  { %1275 = vmatpush3.bf16.msra.mxu0 %v1272_v47  ;;  %v1300_v47 = vpack.c.bf16 %v878_v46, %v877_v45 }
 0x495   :  { %1277 = vmatprep.subr.bf16.mxu0 %v1276_v57 }
 0x496   :  { %1299 = vmatpush3.bf16.msra.mxu1 %v1296_v44 }
 0x497   :  { %1301 = vmatprep.subr.bf16.mxu1 %v1300_v47 }
 0x498   :  { %1279 = vmatpush3.bf16.msra.mxu0 %v1276_v57 }
 0x49a   :  { %1303 = vmatpush3.bf16.msra.mxu1 %v1300_v47 }
 0x566   :  { %v1182_v58 = vpop.f32.mrb[2].mxu0 }
 0x567   :  { %v627_v59 = vpop.f32.mrb[3].mxu0 }
 0x568   :  { %1191 = vmatprep.mubr.msk.f32.mxu0 %vm49_vm0, %v627_v59 }
 0x569   :  { %1192 = vmatmul.mubr.msk.f32.vlgmr.msra.gmra.mrb[4].mxu0 %vm49_vm0, %v1182_v58 }
 0x63c   :  { %v1193_v61 = vpop.f32.mrb[4].mxu0 }
 0x63d   :  { %v723_v62 = vadd.f32 %v1193_v61, %v1073_v60  ;;  %v717_v63 = vpop.f32.mrb[5].mxu0 }
 0x63e   :  { %v718_v0 = vadd.f32 %v1073_v60, %v717_v63 }
 0x63f   :  { %v727_v1 = vadd.f32 %v723_v62, %v1579_v25 }
 0x640   :  { %v726_v2 = vadd.f32 %v718_v0, %v1572_v6  ;;  %v769_v6 = vld [vmem:[%s1858_s5] sm:$0xff] }
 0x641   :  { %v733_v3 = vsel %vm49_vm0, %v727_v1, 0.0  ;;  %v1280_v14 = vpack.c.bf16 %v770_v13, %v769_v6 }
 0x642   :  { %734 = vadd.xlane.f32.xlu1 %v733_v3  ;;  %v730_v4 = vsel %vm49_vm0, %v726_v2, 0.0 }
 0x643   :  { %731 = vadd.xlane.f32.xlu0 %v730_v4  ;;  %1281 = vmatprep.subr.bf16.mxu0 %v1280_v14 }
 0x644   :  { %1283 = vmatpush3.bf16.msra.mxu0 %v1280_v14 }
 0x645   :  { %1285 = vmatprep.subr.bf16.mxu0 %v1284_v17 }
 0x648   :  { %1287 = vmatpush3.bf16.msra.mxu0 %v1284_v17 }
 0x6cf   :  { %v735_v5 = vpop.xlane.xlu1 %734 }
 0x6d0   :  { %v738_v7 = vmul.f32 0.03125, %v735_v5  ;;  %v732_v8 = vpop.xlane.xlu0 %731 }
 0x6d1   :  { %v737_v31 = vmul.f32 0.03125, %v732_v8 }
 0x6d2   :  { %v740_v9 = vsub.f32 %v727_v1, %v738_v7  ;;  %v1081_v1 = vld [vmem:[%s1861_s8 + $0x5] ss:$0 sm:$0xff] }
 0x6d3   :  { %v739_v10 = vsub.f32 %v726_v2, %v737_v31 }
 0x6d4   :  { %v742_v56 = vmul.f32 %v740_v9, %v740_v9 }
 0x6d5   :  { %v741_v11 = vmul.f32 %v739_v10, %v739_v10 }
 0x6d6   :  { %v746_v25 = vsel %vm49_vm0, %v742_v56, 0.0 }
 0x6d7   :  { %v743_v52 = vsel %vm49_vm0, %v741_v11, 0.0 }
 0x6d8   :  { %744 = vadd.xlane.f32.xlu0 %v743_v52 }
 0x6dc   :  { %747 = vadd.xlane.f32.xlu0 %v746_v25 }
 0x765   :  { %v745_v18 = vpop.xlane.xlu0 %744 }
 0x766   :  { %v749_v19 = vmul.f32 0.03125, %v745_v18 }
 0x768   :  { %v751_v21 = vadd.f32 1e-12, %v749_v19 }
 0x769   :  { %v748_v32 = vpop.xlane.xlu0 %747 }
 0x76a   :  { %1429 = vrsqrt.f32 %v751_v21  ;;  %v750_v12 = vmul.f32 0.03125, %v748_v32 }
 0x76c   :  { %v752_v22 = vadd.f32 1e-12, %v750_v12 }
 0x76e   :  { %1431 = vrsqrt.f32 %v752_v22 }
 0x774   :  { %v1430_v23 = vpop.eup %1429 }
 0x775   :  { %v755_v20 = vmul.f32 %v1430_v23, %v739_v10 }
 0x777   :  { %v761_v27 = vmul.f32 %v1076_v24, %v755_v20 }
 0x778   :  { %v1432_v28 = vpop.eup %1431 }
 0x779   :  { %v756_v29 = vmul.f32 %v1432_v28, %v740_v9  ;;  %v767_v34 = vadd.f32 %v1077_v26, %v761_v27 }
 0x77b   :  { %v762_v37 = vmul.f32 %v1076_v24, %v756_v29  ;;  %1202 = vmatprep.mubr.msk.f32.mxu0 %vm49_vm0, %v767_v34 }
 0x77d   :  { %v768_v39 = vadd.f32 %v1077_v26, %v762_v37 }
 0x77f   :  { %1203 = vmatmul.mubr.msk.f32.vlgmr.msra.gmra.mrb[6].mxu0 %vm49_vm0, %v768_v39 }
 0x852   :  { %v1204_v50 = vpop.f32.mrb[6].mxu0 }
 0x853   :  { %v858_v51 = vadd.f32 %v1204_v50, %v1078_v48  ;;  %v852_v53 = vpop.f32.mrb[7].mxu0 }
 0x854   :  { %v853_v54 = vadd.f32 %v1078_v48, %v852_v53 }
 0x855   :  { %v864_v55 = vmul.f32 0.70710677, %v858_v51  ;;  %v862_v62 = vmul.f32 0.5, %v858_v51 }
 0x856   :  { %v863_v57 = vmul.f32 0.70710677, %v853_v54  ;;  %v861_v60 = vmul.f32 0.5, %v853_v54 }
 0x857   :  { %1433 = verf.f32 %v864_v55 }
 0x858   :  { %1435 = verf.f32 %v863_v57 }
 0x861   :  { %v1434_v33 = vpop.eup %1433 }
 0x862   :  { %v1436_v58 = vpop.eup %1435  ;;  %v868_v59 = vadd.f32 1.0, %v1434_v33 }
 0x863   :  { %v867_v61 = vadd.f32 1.0, %v1436_v58 }
 0x864   :  { %v870_v0 = vmul.f32 %v868_v59, %v862_v62 }
 0x865   :  { %v869_v63 = vmul.f32 %v867_v61, %v861_v60 }
 0x867   :  { %1221 = vmatprep.mubr.msk.f32.mxu1 %vm554_vm15, %v869_v63 }
 0x868   :  { %1222 = vmatmul.mubr.msk.f32.vlgmr.msra.gmra.mrb[2].mxu1 %vm554_vm15, %v870_v0 }
 0x93b   :  { %v1223_v2 = vpop.f32.mrb[2].mxu1 }
 0x93c   :  { %v962_v3 = vadd.f32 %v1223_v2, %v1081_v1  ;;  %v956_v4 = vpop.f32.mrb[3].mxu1 }
 0x93d   :  { %v957_v5 = vadd.f32 %v1081_v1, %v956_v4 }
 0x93e   :  { %v966_v7 = vadd.f32 %v962_v3, %v768_v39 }
 0x93f   :  { %v965_v8 = vadd.f32 %v957_v5, %v767_v34 }
 0x940   :  { %v972_v31 = vsel %vm49_vm0, %v966_v7, 0.0 }
 0x941   :  { %973 = vadd.xlane.f32.xlu0 %v972_v31  ;;  %v969_v9 = vsel %vm49_vm0, %v965_v8, 0.0 }
 0x942   :  { %970 = vadd.xlane.f32.xlu1 %v969_v9 }
 0x9ce   :  { %v974_v10 = vpop.xlane.xlu0 %973 }
 0x9cf   :  { %v976_v11 = vmul.f32 0.03125, %v974_v10  ;;  %v971_v52 = vpop.xlane.xlu1 %970 }
 0x9d0   :  { %v975_v56 = vmul.f32 0.03125, %v971_v52 }
 0x9d1   :  { %v978_v25 = vsub.f32 %v966_v7, %v976_v11 }
 0x9d2   :  { %v977_v6 = vsub.f32 %v965_v8, %v975_v56 }
 0x9d3   :  { %v980_v13 = vmul.f32 %v978_v25, %v978_v25 }
 0x9d4   :  { %v979_v14 = vmul.f32 %v977_v6, %v977_v6 }
 0x9d5   :  { %v984_v15 = vsel %vm49_vm0, %v980_v13, 0.0 }
 0x9d6   :  { %985 = vadd.xlane.f32.xlu0 %v984_v15  ;;  %v981_v16 = vsel %vm49_vm0, %v979_v14, 0.0 }
 0x9d7   :  { %982 = vadd.xlane.f32.xlu1 %v981_v16 }
 0x9e8   :  { %1013 = vrot.lane.b32.xlu1 %v1733_v49, %s1497_s25 }
 0xa63   :  { %v986_v17 = vpop.xlane.xlu0 %985 }
 0xa64   :  { %v988_v18 = vmul.f32 0.03125, %v986_v17  ;;  %v983_v19 = vpop.xlane.xlu1 %982 }
 0xa65   :  { %v987_v21 = vmul.f32 0.03125, %v983_v19 }
 0xa66   :  { %v990_v32 = vadd.f32 1e-12, %v988_v18 }
 0xa67   :  { %v989_v12 = vadd.f32 1e-12, %v987_v21 }
 0xa68   :  { %1437 = vrsqrt.f32 %v990_v32  ;;  %v1014_v22 = vpop.permute.xlu1 %1013 }
 0xa69   :  { %1439 = vrsqrt.f32 %v989_v12  ;;  %1017 = vst.msk [vmem:[#allocation4 + $0x8] sm:$0xff] %vm1008_vm13, %v1014_v22 }
 0xa6a   :  { %1452 = shalt.err (!%p1449_p4)
}
 0xa6b   :  { %s1453_s30 = scalar_lea.hbm %s1863_s10, 256 }
 0xa6c   :  { %p1454_p5 = scmp.ne.s32.totalorder %s1863_s10, %s1453_s30  ;;  %p1457_p6 = scmp.lt.u32.totalorder %s1453_s30, %s1863_s10 }
 0xa6e   :  { %p1459_p7 = pnand %p1457_p6, %p1454_p5 }
 0xa70   :  { %1462 = shalt.err (!%p1459_p7)
}
 0xa71   :  { %s1499_s13 = smov 128   ;;  %s1500_s14 = smov 8   ;;  %v1084_v23 = vld [vmem:[%s1861_s8 + $0x3] ss:$0 sm:$0xff]  ;;  %v1085_v26 = vld [vmem:[%s1861_s8 + $0x4] ss:$0 sm:$0xff] }
 0xa72   :  { %1041 = dma.vmem_to_hbm [thread:$0]  %s1036_s26, 256, %s1863_s10, [#allocation5], %s1499_s13, %s1499_s13, %s1500_s14   ;;  %v1438_v49 = vpop.eup %1437 }
 0xa73   :  { %v1440_v24 = vpop.eup %1439  ;;  %v994_v20 = vmul.f32 %v1438_v49, %v978_v25  ;;  %s1501_s21 = smov [#allocation2]  }
 0xa74   :  { %v993_v27 = vmul.f32 %v1440_v24, %v977_v6  ;;  %s1023_s4 = sshll.u32 %s1501_s21, 4  ;;  %s1024_s4 = int_to_ptr.vmem [resolvable:$true] %s1023_s4 }
 0xa75   :  { %v1000_v28 = vmul.f32 %v1084_v23, %v994_v20  ;;  %s1463_s10 = scalar_lea.vmem %s1024_s4, 256  ;;  %p1468_p9 = scmp.lt.s32.totalorder %s1024_s4, %s1024_s4 }
 0xa76   :  { %v999_v29 = vmul.f32 %v1084_v23, %v993_v27  ;;  %p1464_p8 = scmp.ne.s32.totalorder %s1024_s4, %s1463_s10  ;;  %p1469_p10 = scmp.lt.s32.totalorder %s1463_s10, %s1463_s10 }
 0xa77   :  { %v1006_v34 = vadd.f32 %v1085_v26, %v1000_v28 }
 0xa78   :  { %v1005_v37 = vadd.f32 %v1085_v26, %v999_v29  ;;  %p1470_p11 = por %p1469_p10, %p1468_p9 }
 0xa79   :  { %1011 = vst.msk [vmem:[#allocation2 + $0x8] sm:$0xff] %vm49_vm0, %v1006_v34 }
 0xa7a   :  { %1007 = vst.msk [vmem:[#allocation2] sm:$0xff] %vm49_vm0, %v1005_v37  ;;  %p1471_p12 = pnand %p1470_p11, %p1464_p8 }
 0xa7c   :  { %1474 = shalt.err (!%p1471_p12)
}
 0xa7d   :  { %s1475_s2 = scalar_lea.hbm %s1862_s9, 256 }
 0xa7e   :  { %p1476_p13 = scmp.ne.s32.totalorder %s1862_s9, %s1475_s2  ;;  %p1479_p0 = scmp.lt.u32.totalorder %s1475_s2, %s1862_s9 }
 0xa80   :  { %p1481_p1 = pnand %p1479_p0, %p1476_p13 }
 0xa82   :  { %1484 = shalt.err (!%p1481_p1)
}
 0xa83   :  { %1029 = dma.vmem_to_hbm [thread:$0]  %s1024_s4, 256, %s1862_s9, [#allocation3], %s1499_s13, %s1499_s13, %s1500_s14  }
 0xa84   :  { %1485 = dma.done.wait [#allocation3], 256  }
 0xa85   :  { %1486 = vsyncadd [#allocation3], 4294967040 }
 0xa86   :  { %1487 = dma.done.wait [#allocation5], 256  }
 0xa87   :  { %1488 = vsyncadd [#allocation5], 4294967040 }
 0xa88   :  { %1048 = vsyncpa [#allocation3], 1 }
 0xa89   :  { %1049 = vsyncpa [#allocation5], 1 }

</bundles_post_ra>
